<compile_context>
chip_gen: v7x
topology: tpu7x:2x2x1
jax: 0.10.0
libtpu: 0.0.40
codegen_flags: <defaults>
</compile_context>

<pallas_src>
import math
import random
from functools import partial
from typing import Tuple

import jax
import jax.numpy as jnp
from jax.experimental import pallas as pl
from jax.experimental.pallas import tpu as pltpu


# ----------------------------------------------------------------------------
# Kernel
# ----------------------------------------------------------------------------
def _pair_flip_kernel(x1_ref, x2_ref, o1_ref, o2_ref, *, stages):
    """out[r, l] = in[r, l ^ (XOR of `stages`)] along the lane axis."""
    L = x1_ref.shape[-1]
    # One (1, L) iota and one mask per stage, shared between both images and
    # broadcast over the row axis inside the selects.
    lane = jax.lax.broadcasted_iota(jnp.int32, (1, L), dimension=1)
    masks = [(lane & b) == 0 for b in stages]

    def xor_permute(x):
        for b, m in zip(stages, masks):              # static -> fully unrolled
            fwd = pltpu.roll(x, shift=L - b, axis=1)  # fwd[l] = x[l + b]
            bwd = pltpu.roll(x, shift=b, axis=1)      # bwd[l] = x[l - b]
            x = jnp.where(m, fwd, bwd)
        return x

    o1_ref[...] = xor_permute(x1_ref[...])
    o2_ref[...] = xor_permute(x2_ref[...])


# ----------------------------------------------------------------------------
# Chip-aware planning
# ----------------------------------------------------------------------------
def _tpu_params():
    """(target_block_bytes per array, min_grid, physical VMEM bytes)."""
    kind = ""
    try:
        kind = jax.devices()[0].device_kind.lower()
    except Exception:
        pass
    is_v7 = "v7" in kind

    vmem_physical = None
    try:
        info = pltpu.get_tpu_info()
        vmem_physical = int(getattr(info, "vmem_capacity_bytes", 0)) or None
    except Exception:
        vmem_physical = None
    if vmem_physical is None:
        vmem_physical = (64 << 20) if is_v7 else (128 << 20)

    # ~2-4 MiB per array; 2 inputs + 2 outputs double-buffered => ~8x in VMEM.
    target_block_bytes = min(4 << 20, vmem_physical // 24)
    # v7x: 2 TensorCores share "parallel" grid axes -> want an even grid >= 4
    # (each core gets >= 2 steps to pipeline).  v5e/v6e: biggest block wins.
    min_grid = 4 if is_v7 else 1
    return target_block_bytes, min_grid, vmem_physical


def _plan_layout(n_planes, plane, itemsize, target_block_bytes, min_grid):
    """Pick a lane-dense 2-D view (R rows, L lanes) and a row-block size.

    The lane axis holds one plane when plane >= 128, else the smallest
    whole-plane multiple reaching 128 lanes.  Blocks are (block_rows, L), so
    every block is full lane-width (unmasked stores) and every roll stays
    plane-local.
    """
    if plane >= 128:
        k = 1
    else:
        k = 128 // plane
        if n_planes % k:
            k = 1  # ragged tiny input: full-extent lane axis (legal; perf-only)
    L = k * plane
    R = n_planes // k

    row_bytes = L * itemsize
    want = max(1, target_block_bytes // row_bytes)
    pack = max(8, 32 // max(1, itemsize))    # 8 f32 / 16 bf16 / 32 int8 rows

    best = None
    for d in range(1, R + 1):
        if R % d:
            continue
        if not (d == R or d % 8 == 0):       # keep (8, 128)-aligned blocks
            continue
        grid = R // d
        fits = d <= want
        meets = grid >= min_grid and (min_grid <= 1 or grid % 2 == 0
                                      or grid >= 2 * min_grid)
        packed = (d % pack == 0) or (d == R)
        key = (fits, meets, packed, d)
        if best is None or key > best[0]:
            best = (key, d)
    return R, L, best[1]


# ----------------------------------------------------------------------------
# Wrapper
# ----------------------------------------------------------------------------
def _flip_pair_pallas(image1, image2, do_hflip: bool, do_vflip: bool,
                      *, in_place: bool = False):
    """image1, image2: (N, C, H, W) arrays.  Returns the flipped pair."""
    assert image1.shape == image2.shape and image1.dtype == image2.dtype
    N, C, H, W = image1.shape
    # TODO(synk): non-power-of-two H/W would need a lax.rev-style reverse
    # instead of the XOR butterfly; all shapes used here are powers of two.
    assert H & (H - 1) == 0 and W & (W - 1) == 0, "H and W must be powers of two"

    if not (do_hflip or do_vflip):
        return image1, image2

    # Note: when W >= 128 the vflip stages could be removed entirely by
    # mirroring input row-block indices in the index_map (out_specs identity);
    # not done here since this module's images keep W < 128.
    stages = []
    if do_hflip:                      # complement the `w` bits of i = h*W + w
        stages += [1 << s for s in range(int(math.log2(W)))]
    if do_vflip:                      # complement the `h` bits
        stages += [W << s for s in range(int(math.log2(H)))]

    itemsize = jnp.dtype(image1.dtype).itemsize
    target_block_bytes, min_grid, vmem_physical = _tpu_params()
    n_planes, plane = N * C, H * W
    R, L, block_rows = _plan_layout(n_planes, plane, itemsize,
                                    target_block_bytes, min_grid)
    grid = (R // block_rows,)

    x1 = image1.reshape(R, L)
    x2 = image2.reshape(R, L)

    spec = pl.BlockSpec((block_rows, L), lambda i: (i, 0))
    out_shape = (jax.ShapeDtypeStruct((R, L), image1.dtype),
                 jax.ShapeDtypeStruct((R, L), image2.dtype))

    # 2 inputs + 2 outputs double-buffered (~8x block) + roll/select temps;
    # clamped under physical VMEM (64 MiB on v7x, 128 MiB on v5e/v6e).
    block_bytes = block_rows * L * itemsize
    vmem_limit = min(int(0.9 * vmem_physical),
                     max(32 << 20, 12 * block_bytes + (4 << 20)))

    # In-place flip is safe only while in/out index maps stay identity and the
    # permutation is block-local (both true here); off unless caller donates.
    aliases = {0: 0, 1: 1} if in_place else {}

    y1, y2 = pl.pallas_call(
        partial(_pair_flip_kernel, stages=tuple(stages)),
        out_shape=out_shape,
        grid_spec=pltpu.PrefetchScalarGridSpec(
            num_scalar_prefetch=0,
            grid=grid,
            in_specs=[spec, spec],
            out_specs=[spec, spec],
        ),
        input_output_aliases=aliases,
        compiler_params=pltpu.CompilerParams(
            dimension_semantics=("parallel",),
            vmem_limit_bytes=int(vmem_limit),
        ),
    )(x1, x2)

    return y1.reshape(N, C, H, W), y2.reshape(N, C, H, W)


class PairTransform:
    """JAX/Pallas port of the PyTorch PairTransform module.

    Keeps the module's `random.random() > p` convention (flip with probability
    1 - p) and draws two Python randoms per call, in the same order, from the
    global `random` state seeded in __init__ (matching the original module).
    """

    def __init__(self, p: float = 0.5, seed: int = 42) -> None:
        self.p = p
        random.seed(seed)

    def __call__(self, image1, image2) -> Tuple[jax.Array, jax.Array]:
        do_hflip = random.random() > self.p
        do_vflip = random.random() > self.p
        if not (do_hflip or do_vflip):
            return image1, image2
        return _flip_pair_pallas(image1, image2, do_hflip, do_vflip)


if __name__ == "__main__":
    key = jax.random.PRNGKey(0)
    k1, k2 = jax.random.split(key)
    N, C, H, W = 2, 4, 16, 16
    image1 = jax.random.normal(k1, (N, C, H, W), dtype=jnp.float32)
    image2 = jax.random.normal(k2, (N, C, H, W), dtype=jnp.float32)

    # Module path (seed 42 -> first draw > 0.5 => hflip; second <= 0.5 => no vflip).
    transform = PairTransform(p=0.5, seed=42)
    out1, out2 = transform(image1, image2)
    out1 = jax.block_until_ready(out1)
    out2 = jax.block_until_ready(out2)

    random.seed(42)
    ref_h = random.random() > 0.5
    ref_v = random.random() > 0.5
    ref1, ref2 = image1, image2
    if ref_h:
        ref1, ref2 = ref1[..., ::-1], ref2[..., ::-1]
    if ref_v:
        ref1, ref2 = ref1[..., ::-1, :], ref2[..., ::-1, :]
    assert out1.shape == (N, C, H, W) and out2.shape == (N, C, H, W)
    assert jnp.array_equal(out1, ref1) and jnp.array_equal(out2, ref2)

    # Exercise every flip combination of the kernel directly.
    for hf, vf in [(True, False), (False, True), (True, True)]:
        o1, o2 = _flip_pair_pallas(image1, image2, hf, vf)
        r1, r2 = image1, image2
        if hf:
            r1, r2 = r1[..., ::-1], r2[..., ::-1]
        if vf:
            r1, r2 = r1[..., ::-1, :], r2[..., ::-1, :]
        assert jnp.array_equal(jax.block_until_ready(o1), r1)
        assert jnp.array_equal(jax.block_until_ready(o2), r2)

    print("KERNEL_OK")
</pallas_src>

<mosaic_0001>
module attributes {stable_mosaic.version = 11 : i64} {
  func.func @_pair_flip_kernel(%arg0: i32, %arg1: memref<8x256xf32, #tpu.memory_space<vmem>>, %arg2: memref<8x256xf32, #tpu.memory_space<vmem>>, %arg3: memref<8x256xf32, #tpu.memory_space<vmem>>, %arg4: memref<8x256xf32, #tpu.memory_space<vmem>>) attributes {dimension_semantics = [#tpu.dimension_semantics<parallel>], iteration_bounds = array<i64: 1>, scalar_prefetch = 0 : i64, scratch_operands = 0 : i64, tpu.core_type = #tpu.core_type<tc>, window_params = [{transform_indices = @transform_0, window_bounds = array<i64: 8, 256>}, {transform_indices = @transform_1, window_bounds = array<i64: 8, 256>}, {transform_indices = @transform_2, window_bounds = array<i64: 8, 256>}, {transform_indices = @transform_3, window_bounds = array<i64: 8, 256>}]} {
    %0 = tpu.iota {dimensions = array<i32: 1>} : vector<1x256xi32>
    %c1_i32 = arith.constant 1 : i32
    %1 = vector.broadcast %c1_i32 : i32 to vector<1x256xi32>
    %2 = arith.andi %0, %1 : vector<1x256xi32>
    %c0_i32 = arith.constant 0 : i32
    %3 = vector.broadcast %c0_i32 : i32 to vector<1x256xi32>
    %4 = arith.cmpi eq, %2, %3 : vector<1x256xi32>
    %c2_i32 = arith.constant 2 : i32
    %5 = vector.broadcast %c2_i32 : i32 to vector<1x256xi32>
    %6 = arith.andi %0, %5 : vector<1x256xi32>
    %c0_i32_0 = arith.constant 0 : i32
    %7 = vector.broadcast %c0_i32_0 : i32 to vector<1x256xi32>
    %8 = arith.cmpi eq, %6, %7 : vector<1x256xi32>
    %c4_i32 = arith.constant 4 : i32
    %9 = vector.broadcast %c4_i32 : i32 to vector<1x256xi32>
    %10 = arith.andi %0, %9 : vector<1x256xi32>
    %c0_i32_1 = arith.constant 0 : i32
    %11 = vector.broadcast %c0_i32_1 : i32 to vector<1x256xi32>
    %12 = arith.cmpi eq, %10, %11 : vector<1x256xi32>
    %c8_i32 = arith.constant 8 : i32
    %13 = vector.broadcast %c8_i32 : i32 to vector<1x256xi32>
    %14 = arith.andi %0, %13 : vector<1x256xi32>
    %c0_i32_2 = arith.constant 0 : i32
    %15 = vector.broadcast %c0_i32_2 : i32 to vector<1x256xi32>
    %16 = arith.cmpi eq, %14, %15 : vector<1x256xi32>
    %c0 = arith.constant 0 : index
    %c0_3 = arith.constant 0 : index
    %17 = vector.load %arg1[%c0, %c0_3] : memref<8x256xf32, #tpu.memory_space<vmem>>, vector<8x256xf32>
    %c255_i32 = arith.constant 255 : i32
    %18 = tpu.dynamic_rotate %17 by %c255_i32 dim 1 : vector<8x256xf32>, i32 -> vector<8x256xf32>
    %c1_i32_4 = arith.constant 1 : i32
    %19 = tpu.dynamic_rotate %17 by %c1_i32_4 dim 1 : vector<8x256xf32>, i32 -> vector<8x256xf32>
    %20 = vector.shape_cast %4 : vector<1x256xi1> to vector<1x256xi1>
    %21 = vector.broadcast %20 : vector<1x256xi1> to vector<8x256xi1>
    %22 = arith.select %21, %18, %19 : vector<8x256xi1>, vector<8x256xf32>
    %c254_i32 = arith.constant 254 : i32
    %23 = tpu.dynamic_rotate %22 by %c254_i32 dim 1 : vector<8x256xf32>, i32 -> vector<8x256xf32>
    %c2_i32_5 = arith.constant 2 : i32
    %24 = tpu.dynamic_rotate %22 by %c2_i32_5 dim 1 : vector<8x256xf32>, i32 -> vector<8x256xf32>
    %25 = vector.shape_cast %8 : vector<1x256xi1> to vector<1x256xi1>
    %26 = vector.broadcast %25 : vector<1x256xi1> to vector<8x256xi1>
    %27 = arith.select %26, %23, %24 : vector<8x256xi1>, vector<8x256xf32>
    %c252_i32 = arith.constant 252 : i32
    %28 = tpu.dynamic_rotate %27 by %c252_i32 dim 1 : vector<8x256xf32>, i32 -> vector<8x256xf32>
    %c4_i32_6 = arith.constant 4 : i32
    %29 = tpu.dynamic_rotate %27 by %c4_i32_6 dim 1 : vector<8x256xf32>, i32 -> vector<8x256xf32>
    %30 = vector.shape_cast %12 : vector<1x256xi1> to vector<1x256xi1>
    %31 = vector.broadcast %30 : vector<1x256xi1> to vector<8x256xi1>
    %32 = arith.select %31, %28, %29 : vector<8x256xi1>, vector<8x256xf32>
    %c248_i32 = arith.constant 248 : i32
    %33 = tpu.dynamic_rotate %32 by %c248_i32 dim 1 : vector<8x256xf32>, i32 -> vector<8x256xf32>
    %c8_i32_7 = arith.constant 8 : i32
    %34 = tpu.dynamic_rotate %32 by %c8_i32_7 dim 1 : vector<8x256xf32>, i32 -> vector<8x256xf32>
    %35 = vector.shape_cast %16 : vector<1x256xi1> to vector<1x256xi1>
    %36 = vector.broadcast %35 : vector<1x256xi1> to vector<8x256xi1>
    %37 = arith.select %36, %33, %34 : vector<8x256xi1>, vector<8x256xf32>
    %c0_8 = arith.constant 0 : index
    %c0_9 = arith.constant 0 : index
    %38 = vector.load %arg3[%c0_8, %c0_9] : memref<8x256xf32, #tpu.memory_space<vmem>>, vector<8x256xf32>
    tpu.vector_store %arg3[%c0_8, %c0_9], %37 {strides = array<i32>} : memref<8x256xf32, #tpu.memory_space<vmem>>, vector<8x256xf32>,
    %c0_10 = arith.constant 0 : index
    %c0_11 = arith.constant 0 : index
    %39 = vector.load %arg2[%c0_10, %c0_11] : memref<8x256xf32, #tpu.memory_space<vmem>>, vector<8x256xf32>
    %c255_i32_12 = arith.constant 255 : i32
    %40 = tpu.dynamic_rotate %39 by %c255_i32_12 dim 1 : vector<8x256xf32>, i32 -> vector<8x256xf32>
    %c1_i32_13 = arith.constant 1 : i32
    %41 = tpu.dynamic_rotate %39 by %c1_i32_13 dim 1 : vector<8x256xf32>, i32 -> vector<8x256xf32>
    %42 = vector.shape_cast %4 : vector<1x256xi1> to vector<1x256xi1>
    %43 = vector.broadcast %42 : vector<1x256xi1> to vector<8x256xi1>
    %44 = arith.select %43, %40, %41 : vector<8x256xi1>, vector<8x256xf32>
    %c254_i32_14 = arith.constant 254 : i32
    %45 = tpu.dynamic_rotate %44 by %c254_i32_14 dim 1 : vector<8x256xf32>, i32 -> vector<8x256xf32>
    %c2_i32_15 = arith.constant 2 : i32
    %46 = tpu.dynamic_rotate %44 by %c2_i32_15 dim 1 : vector<8x256xf32>, i32 -> vector<8x256xf32>
    %47 = vector.shape_cast %8 : vector<1x256xi1> to vector<1x256xi1>
    %48 = vector.broadcast %47 : vector<1x256xi1> to vector<8x256xi1>
    %49 = arith.select %48, %45, %46 : vector<8x256xi1>, vector<8x256xf32>
    %c252_i32_16 = arith.constant 252 : i32
    %50 = tpu.dynamic_rotate %49 by %c252_i32_16 dim 1 : vector<8x256xf32>, i32 -> vector<8x256xf32>
    %c4_i32_17 = arith.constant 4 : i32
    %51 = tpu.dynamic_rotate %49 by %c4_i32_17 dim 1 : vector<8x256xf32>, i32 -> vector<8x256xf32>
    %52 = vector.shape_cast %12 : vector<1x256xi1> to vector<1x256xi1>
    %53 = vector.broadcast %52 : vector<1x256xi1> to vector<8x256xi1>
    %54 = arith.select %53, %50, %51 : vector<8x256xi1>, vector<8x256xf32>
    %c248_i32_18 = arith.constant 248 : i32
    %55 = tpu.dynamic_rotate %54 by %c248_i32_18 dim 1 : vector<8x256xf32>, i32 -> vector<8x256xf32>
    %c8_i32_19 = arith.constant 8 : i32
    %56 = tpu.dynamic_rotate %54 by %c8_i32_19 dim 1 : vector<8x256xf32>, i32 -> vector<8x256xf32>
    %57 = vector.shape_cast %16 : vector<1x256xi1> to vector<1x256xi1>
    %58 = vector.broadcast %57 : vector<1x256xi1> to vector<8x256xi1>
    %59 = arith.select %58, %55, %56 : vector<8x256xi1>, vector<8x256xf32>
    %c0_20 = arith.constant 0 : index
    %c0_21 = arith.constant 0 : index
    %60 = vector.load %arg4[%c0_20, %c0_21] : memref<8x256xf32, #tpu.memory_space<vmem>>, vector<8x256xf32>
    tpu.vector_store %arg4[%c0_20, %c0_21], %59 {strides = array<i32>} : memref<8x256xf32, #tpu.memory_space<vmem>>, vector<8x256xf32>,
    return
  }
  func.func @transform_0(%arg0: i32) -> (i32, i32) {
    %c0_i32 = arith.constant 0 : i32
    %c0_i32_0 = arith.constant 0 : i32
    return %arg0, %c0_i32 : i32, i32
  }
  func.func @transform_1(%arg0: i32) -> (i32, i32) {
    %c0_i32 = arith.constant 0 : i32
    %c0_i32_0 = arith.constant 0 : i32
    return %arg0, %c0_i32 : i32, i32
  }
  func.func @transform_2(%arg0: i32) -> (i32, i32) {
    %c0_i32 = arith.constant 0 : i32
    %c0_i32_0 = arith.constant 0 : i32
    return %arg0, %c0_i32 : i32, i32
  }
  func.func @transform_3(%arg0: i32) -> (i32, i32) {
    %c0_i32 = arith.constant 0 : i32
    %c0_i32_0 = arith.constant 0 : i32
    return %arg0, %c0_i32 : i32, i32
  }
}

</mosaic_0001>

<bundles_post_ra>
// kernel: tpu_custom_call.1
= control target key start
LH: loop header
LB: loop body
LE: loop exit
PB: predicated region body
PF: predicated region fallthrough
CT: control target
= control target key end

     0   :  { %9 = vsyncpa [#allocation3], 0  ;;  %s569_s0 = inlined_call_operand.hbm [shape: f32[8,256], index: 0, kind: input, shape index: {}]   ;;  %s570_s1 = inlined_call_operand.hbm [shape: f32[8,256], index: 1, kind: input, shape index: {}]   ;;  %s571_s2 = inlined_call_operand.hbm [shape: f32[8,256], index: 2, kind: output, shape index: {0}]   ;;  %s572_s3 = inlined_call_operand.hbm [shape: f32[8,256], index: 3, kind: output, shape index: {1}]  }
   0x1   :  { %10 = vsyncpa [#allocation6], 0 }
   0x2   :  { %11 = vsyncpa [#allocation4], 0 }
   0x3   :  { %12 = vsyncpa [#allocation9], 0  ;;  %s340_s12 = smov [#allocation2]   ;;  %s341_s14 = smov [#allocation5]  }
   0x4   :  { %s19_s13 = sshll.u32 %s340_s12, 4  ;;  %s29_s15 = sshll.u32 %s341_s14, 4  ;;  %s20_s13 = int_to_ptr.vmem [resolvable:$true] %s19_s13  ;;  %s30_s15 = int_to_ptr.vmem [resolvable:$true] %s29_s15 }
   0x5   :  { %s244_s18 = scalar_lea.hbm %s569_s0, 256 }
   0x6   :  { %p245_p0 = scmp.ne.s32.totalorder %s569_s0, %s244_s18  ;;  %p248_p1 = scmp.lt.u32.totalorder %s244_s18, %s569_s0 }
   0x8   :  { %p250_p2 = pnand %p248_p1, %p245_p0 }
   0xa   :  { %253 = shalt.err (!%p250_p2)
}
   0xb   :  { %s254_s23 = scalar_lea.vmem %s20_s13, 256  ;;  %p259_p4 = scmp.lt.s32.totalorder %s20_s13, %s20_s13 }
   0xc   :  { %p255_p3 = scmp.ne.s32.totalorder %s20_s13, %s254_s23  ;;  %p260_p5 = scmp.lt.s32.totalorder %s254_s23, %s254_s23 }
   0xe   :  { %p261_p6 = por %p260_p5, %p259_p4 }
  0x10   :  { %p262_p7 = pnand %p261_p6, %p255_p3 }
  0x12   :  { %265 = shalt.err (!%p262_p7)
}
  0x13   :  { %22 = dma.hbm_to_vmem [thread:$0]  %s569_s0, 256, %s20_s13, [#allocation3]  }
  0x14   :  { %s266_s28 = scalar_lea.hbm %s570_s1, 256 }
  0x15   :  { %p267_p8 = scmp.ne.s32.totalorder %s570_s1, %s266_s28  ;;  %p270_p9 = scmp.lt.u32.totalorder %s266_s28, %s570_s1 }
  0x17   :  { %p272_p10 = pnand %p270_p9, %p267_p8 }
  0x19   :  { %275 = shalt.err (!%p272_p10)
}
  0x1a   :  { %s276_s6 = scalar_lea.vmem %s30_s15, 256  ;;  %p281_p12 = scmp.lt.s32.totalorder %s30_s15, %s30_s15 }
  0x1b   :  { %p277_p11 = scmp.ne.s32.totalorder %s30_s15, %s276_s6  ;;  %p282_p13 = scmp.lt.s32.totalorder %s276_s6, %s276_s6 }
  0x1d   :  { %p283_p0 = por %p282_p13, %p281_p12 }
  0x1f   :  { %p284_p1 = pnand %p283_p0, %p277_p11 }
  0x21   :  { %287 = shalt.err (!%p284_p1)
}
  0x22   :  { %32 = dma.hbm_to_vmem [thread:$0]  %s570_s1, 256, %s30_s15, [#allocation6]  }
  0x23   :  { %332 = dma.done.wait [#allocation3], 256  }
  0x24   :  { %333 = vsyncadd [#allocation3], 4294967040 }
  0x25   :  { %334 = dma.done.wait [#allocation6], 256  }
  0x26   :  { %335 = vsyncadd [#allocation6], 4294967040  ;;  %v58_v0 = vld [vmem:[#allocation2] sm:$0xff]  ;;  %s342_s8 = smov 1   ;;  %s343_s9 = smov 127   ;;  %v59_v1 = vld [vmem:[#allocation2 + $0x8] sm:$0xff]  ;;  %v39_v4 = vlaneseq }
  0x27   :  { %67 = vrot.lane.b32.xlu1 %v58_v0, %s342_s8  ;;  %60 = vrot.lane.b32.xlu0 %v58_v0, %s343_s9  ;;  %v143_v2 = vld [vmem:[#allocation5 + $0x8] sm:$0xff]  ;;  %v142_v3 = vld [vmem:[#allocation5] sm:$0xff]  ;;  %s344_s1 = smov 126   ;;  %s345_s10 = smov 2  }
  0x28   :  { %v396_v5 = vand.u32 127, %v39_v4  ;;  %s346_s11 = smov 124   ;;  %s347_s12 = smov 4  }
  0x29   :  { %s348_s13 = smov 120   ;;  %s349_s14 = smov 8  }
  0x2a   :  { %v399_v6 = vadd.s32 128, %v396_v5  ;;  %v42_v8 = vand.u32 1, %v396_v5  ;;  %vm71_vm0 = vcmp.lt.s32.totalorder %v396_v5, 1  ;;  %vm64_vm1 = vcmp.lt.s32.totalorder %v396_v5, 127  ;;  %s350_s15 = smov [#allocation7]  }
  0x2b   :  { %69 = vrot.lane.b32.xlu1 %v59_v1, %s342_s8  ;;  %62 = vrot.lane.b32.xlu0 %v59_v1, %s343_s9  ;;  %v46_v31 = vand.u32 2, %v396_v5  ;;  %vm84_vm4 = vcmp.lt.s32.totalorder %v396_v5, 126  ;;  %vm91_vm5 = vcmp.lt.s32.totalorder %v396_v5, 2  ;;  %v50_v55 = vand.u32 4, %v396_v5  ;;  %s208_s16 = sshll.u32 %s350_s15, 4  ;;  %s209_s16 = int_to_ptr.vmem [resolvable:$true] %s208_s16 }
  0x2c   :  { %v43_v7 = vand.u32 1, %v399_v6  ;;  %vm409_vm3 = vcmp.eq.s32.totalorder %v42_v8, 0  ;;  %v47_v32 = vand.u32 2, %v399_v6  ;;  %v51_v56 = vand.u32 4, %v399_v6  ;;  %s288_s17 = scalar_lea.vmem %s209_s16, 256  ;;  %p293_p3 = scmp.lt.s32.totalorder %s209_s16, %s209_s16 }
  0x2d   :  { %vm441_vm6 = vcmp.eq.s32.totalorder %v46_v31, 0  ;;  %vm104_vm8 = vcmp.lt.s32.totalorder %v396_v5, 124  ;;  %vm111_vm9 = vcmp.lt.s32.totalorder %v396_v5, 4  ;;  %vm477_vm10 = vcmp.eq.s32.totalorder %v50_v55, 0  ;;  %p289_p2 = scmp.ne.s32.totalorder %s209_s16, %s288_s17  ;;  %p294_p4 = scmp.lt.s32.totalorder %s288_s17, %s288_s17 }
  0x2e   :  { %vm405_vm2 = vcmp.eq.s32.totalorder %v43_v7, 0  ;;  %vm445_vm7 = vcmp.eq.s32.totalorder %v47_v32, 0  ;;  %vm481_vm11 = vcmp.eq.s32.totalorder %v51_v56, 0  ;;  %vm124_vm12 = vcmp.lt.s32.totalorder %v396_v5, 120 }
  0x2f   :  { %146 = vrot.lane.b32.xlu1 %v143_v2, %s343_s9  ;;  %144 = vrot.lane.b32.xlu0 %v142_v3, %s343_s9  ;;  %vm131_vm13 = vcmp.lt.s32.totalorder %v396_v5, 8  ;;  %p295_p5 = por %p294_p4, %p293_p3 }
  0x31   :  { %p296_p6 = pnand %p295_p5, %p289_p2 }
  0x33   :  { %152 = vrot.lane.b32.xlu1 %v143_v2, %s342_s8  ;;  %150 = vrot.lane.b32.xlu0 %v142_v3, %s342_s8 }
  0x99   :  { %v68_v9 = vpop.permute.xlu1 %67  ;;  %v61_v10 = vpop.permute.xlu0 %60 }
  0x9d   :  { %v70_v13 = vpop.permute.xlu1 %69  ;;  %v63_v14 = vpop.permute.xlu0 %62 }
  0x9e   :  { %v72_v15 = vsel %vm71_vm0, %v68_v9, %v70_v13  ;;  %v73_v16 = vsel %vm71_vm0, %v70_v13, %v68_v9  ;;  %v65_v17 = vsel %vm64_vm1, %v61_v10, %v63_v14  ;;  %v66_v18 = vsel %vm64_vm1, %v63_v14, %v61_v10 }
  0x9f   :  { %v79_v19 = vsel %vm405_vm2, %v66_v18, %v72_v15  ;;  %v78_v20 = vsel %vm409_vm3, %v65_v17, %v73_v16  ;;  %v54_v17 = vand.u32 8, %v396_v5  ;;  %v55_v18 = vand.u32 8, %v399_v6 }
  0xa0   :  { %82 = vrot.lane.b32.xlu1 %v79_v19, %s344_s1  ;;  %80 = vrot.lane.b32.xlu0 %v78_v20, %s344_s1 }
  0xa1   :  { %v147_v21 = vpop.permute.xlu1 %146  ;;  %v145_v22 = vpop.permute.xlu0 %144  ;;  %vm513_vm14 = vcmp.eq.s32.totalorder %v54_v17, 0  ;;  %vm517_vm15 = vcmp.eq.s32.totalorder %v55_v18, 0 }
  0xa2   :  { %v148_v25 = vsel %vm64_vm1, %v145_v22, %v147_v21  ;;  %v149_v26 = vsel %vm64_vm1, %v147_v21, %v145_v22 }
  0xa4   :  { %89 = vrot.lane.b32.xlu1 %v79_v19, %s345_s10  ;;  %87 = vrot.lane.b32.xlu0 %v78_v20, %s345_s10 }
  0xa5   :  { %v153_v23 = vpop.permute.xlu1 %152  ;;  %v151_v24 = vpop.permute.xlu0 %150 }
  0xa6   :  { %v154_v27 = vsel %vm71_vm0, %v151_v24, %v153_v23  ;;  %v155_v28 = vsel %vm71_vm0, %v153_v23, %v151_v24 }
  0xa7   :  { %v156_v29 = vsel %vm409_vm3, %v148_v25, %v155_v28  ;;  %v157_v30 = vsel %vm405_vm2, %v149_v26, %v154_v27 }
  0xa8   :  { %158 = vrot.lane.b32.xlu0 %v156_v29, %s344_s1  ;;  %160 = vrot.lane.b32.xlu1 %v157_v30, %s344_s1 }
  0xac   :  { %164 = vrot.lane.b32.xlu0 %v156_v29, %s345_s10  ;;  %166 = vrot.lane.b32.xlu1 %v157_v30, %s345_s10 }
 0x112   :  { %v83_v33 = vpop.permute.xlu1 %82  ;;  %v81_v34 = vpop.permute.xlu0 %80 }
 0x113   :  { %v85_v39 = vsel %vm84_vm4, %v81_v34, %v83_v33  ;;  %v86_v40 = vsel %vm84_vm4, %v83_v33, %v81_v34 }
 0x116   :  { %v90_v37 = vpop.permute.xlu1 %89  ;;  %v88_v38 = vpop.permute.xlu0 %87 }
 0x117   :  { %v92_v41 = vsel %vm91_vm5, %v88_v38, %v90_v37  ;;  %v93_v42 = vsel %vm91_vm5, %v90_v37, %v88_v38 }
 0x118   :  { %v98_v43 = vsel %vm441_vm6, %v85_v39, %v93_v42  ;;  %v99_v44 = vsel %vm445_vm7, %v86_v40, %v92_v41 }
 0x119   :  { %100 = vrot.lane.b32.xlu0 %v98_v43, %s346_s11  ;;  %102 = vrot.lane.b32.xlu1 %v99_v44, %s346_s11 }
 0x11a   :  { %v161_v45 = vpop.permute.xlu1 %160  ;;  %v159_v46 = vpop.permute.xlu0 %158 }
 0x11b   :  { %v162_v49 = vsel %vm84_vm4, %v159_v46, %v161_v45  ;;  %v163_v50 = vsel %vm84_vm4, %v161_v45, %v159_v46 }
 0x11d   :  { %107 = vrot.lane.b32.xlu0 %v98_v43, %s347_s12  ;;  %109 = vrot.lane.b32.xlu1 %v99_v44, %s347_s12 }
 0x11e   :  { %v167_v47 = vpop.permute.xlu1 %166  ;;  %v165_v48 = vpop.permute.xlu0 %164 }
 0x11f   :  { %v168_v51 = vsel %vm91_vm5, %v165_v48, %v167_v47  ;;  %v169_v52 = vsel %vm91_vm5, %v167_v47, %v165_v48 }
 0x120   :  { %v170_v53 = vsel %vm441_vm6, %v162_v49, %v169_v52  ;;  %v171_v54 = vsel %vm445_vm7, %v163_v50, %v168_v51 }
 0x121   :  { %172 = vrot.lane.b32.xlu0 %v170_v53, %s346_s11  ;;  %174 = vrot.lane.b32.xlu1 %v171_v54, %s346_s11 }
 0x125   :  { %178 = vrot.lane.b32.xlu0 %v170_v53, %s347_s12  ;;  %180 = vrot.lane.b32.xlu1 %v171_v54, %s347_s12 }
 0x18b   :  { %v103_v57 = vpop.permute.xlu1 %102  ;;  %v101_v58 = vpop.permute.xlu0 %100 }
 0x18c   :  { %v105_v63 = vsel %vm104_vm8, %v101_v58, %v103_v57  ;;  %v106_v0 = vsel %vm104_vm8, %v103_v57, %v101_v58 }
 0x18f   :  { %v110_v61 = vpop.permute.xlu1 %109  ;;  %v108_v62 = vpop.permute.xlu0 %107 }
 0x190   :  { %v112_v1 = vsel %vm111_vm9, %v108_v62, %v110_v61  ;;  %v113_v2 = vsel %vm111_vm9, %v110_v61, %v108_v62 }
 0x191   :  { %v118_v3 = vsel %vm477_vm10, %v105_v63, %v113_v2  ;;  %v119_v4 = vsel %vm481_vm11, %v106_v0, %v112_v1 }
 0x192   :  { %120 = vrot.lane.b32.xlu0 %v118_v3, %s348_s13  ;;  %122 = vrot.lane.b32.xlu1 %v119_v4, %s348_s13 }
 0x193   :  { %v175_v7 = vpop.permute.xlu1 %174  ;;  %v173_v8 = vpop.permute.xlu0 %172 }
 0x194   :  { %v176_v11 = vsel %vm104_vm8, %v173_v8, %v175_v7  ;;  %v177_v12 = vsel %vm104_vm8, %v175_v7, %v173_v8 }
 0x196   :  { %127 = vrot.lane.b32.xlu0 %v118_v3, %s349_s14  ;;  %129 = vrot.lane.b32.xlu1 %v119_v4, %s349_s14 }
 0x197   :  { %v181_v9 = vpop.permute.xlu1 %180  ;;  %v179_v10 = vpop.permute.xlu0 %178 }
 0x198   :  { %v182_v13 = vsel %vm111_vm9, %v179_v10, %v181_v9  ;;  %v183_v14 = vsel %vm111_vm9, %v181_v9, %v179_v10 }
 0x199   :  { %v184_v15 = vsel %vm477_vm10, %v176_v11, %v183_v14  ;;  %v185_v16 = vsel %vm481_vm11, %v177_v12, %v182_v13 }
 0x19a   :  { %186 = vrot.lane.b32.xlu0 %v184_v15, %s348_s13  ;;  %188 = vrot.lane.b32.xlu1 %v185_v16, %s348_s13 }
 0x19e   :  { %192 = vrot.lane.b32.xlu0 %v184_v15, %s349_s14  ;;  %194 = vrot.lane.b32.xlu1 %v185_v16, %s349_s14 }
 0x204   :  { %v123_v19 = vpop.permute.xlu1 %122  ;;  %v121_v20 = vpop.permute.xlu0 %120 }
 0x205   :  { %v125_v6 = vsel %vm124_vm12, %v121_v20, %v123_v19  ;;  %v126_v25 = vsel %vm124_vm12, %v123_v19, %v121_v20 }
 0x208   :  { %v130_v23 = vpop.permute.xlu1 %129  ;;  %v128_v24 = vpop.permute.xlu0 %127 }
 0x209   :  { %v132_v26 = vsel %vm131_vm13, %v128_v24, %v130_v23  ;;  %v133_v27 = vsel %vm131_vm13, %v130_v23, %v128_v24 }
 0x20a   :  { %v138_v28 = vsel %vm513_vm14, %v125_v6, %v133_v27  ;;  %v139_v29 = vsel %vm517_vm15, %v126_v25, %v132_v26 }
 0x20b   :  { %140 = vst [vmem:[#allocation7] sm:$0xff] %v138_v28  ;;  %141 = vst [vmem:[#allocation7 + $0x8] sm:$0xff] %v139_v29 }
 0x20c   :  { %v189_v30 = vpop.permute.xlu1 %188  ;;  %v187_v31 = vpop.permute.xlu0 %186 }
 0x20d   :  { %299 = shalt.err (!%p296_p6)
}
 0x20e   :  { %s300_s20 = scalar_lea.hbm %s571_s2, 256 }
 0x20f   :  { %p301_p7 = scmp.ne.s32.totalorder %s571_s2, %s300_s20  ;;  %p304_p8 = scmp.lt.u32.totalorder %s300_s20, %s571_s2 }
 0x211   :  { %p306_p9 = pnand %p304_p8, %p301_p7 }
 0x213   :  { %309 = shalt.err (!%p306_p9)
}
 0x214   :  { %211 = dma.vmem_to_hbm [thread:$0]  %s209_s16, 256, %s571_s2, [#allocation4]   ;;  %v195_v32 = vpop.permute.xlu1 %194  ;;  %v193_v33 = vpop.permute.xlu0 %192  ;;  %v190_v34 = vsel %vm124_vm12, %v187_v31, %v189_v30  ;;  %v191_v35 = vsel %vm124_vm12, %v189_v30, %v187_v31 }
 0x215   :  { %s351_s27 = smov [#allocation8]   ;;  %v196_v36 = vsel %vm131_vm13, %v193_v33, %v195_v32  ;;  %v197_v37 = vsel %vm131_vm13, %v195_v32, %v193_v33 }
 0x216   :  { %s218_s28 = sshll.u32 %s351_s27, 4  ;;  %v198_v38 = vsel %vm513_vm14, %v190_v34, %v197_v37  ;;  %v199_v39 = vsel %vm517_vm15, %v191_v35, %v196_v36  ;;  %s219_s28 = int_to_ptr.vmem [resolvable:$true] %s218_s28 }
 0x217   :  { %200 = vst [vmem:[#allocation8] sm:$0xff] %v198_v38  ;;  %201 = vst [vmem:[#allocation8 + $0x8] sm:$0xff] %v199_v39  ;;  %s310_s2 = scalar_lea.vmem %s219_s28, 256  ;;  %p315_p11 = scmp.lt.s32.totalorder %s219_s28, %s219_s28 }
 0x218   :  { %p311_p10 = scmp.ne.s32.totalorder %s219_s28, %s310_s2  ;;  %p316_p12 = scmp.lt.s32.totalorder %s310_s2, %s310_s2 }
 0x21a   :  { %p317_p13 = por %p316_p12, %p315_p11 }
 0x21c   :  { %p318_p0 = pnand %p317_p13, %p311_p10 }
 0x21e   :  { %321 = shalt.err (!%p318_p0)
}
 0x21f   :  { %s322_s4 = scalar_lea.hbm %s572_s3, 256 }
 0x220   :  { %p323_p1 = scmp.ne.s32.totalorder %s572_s3, %s322_s4  ;;  %p326_p2 = scmp.lt.u32.totalorder %s322_s4, %s572_s3 }
 0x222   :  { %p328_p3 = pnand %p326_p2, %p323_p1 }
 0x224   :  { %331 = shalt.err (!%p328_p3)
}
 0x225   :  { %221 = dma.vmem_to_hbm [thread:$0]  %s219_s28, 256, %s572_s3, [#allocation9]  }
 0x226   :  { %336 = dma.done.wait [#allocation4], 256  }
 0x227   :  { %337 = vsyncadd [#allocation4], 4294967040 }
 0x228   :  { %338 = dma.done.wait [#allocation9], 256  }
 0x229   :  { %339 = vsyncadd [#allocation9], 4294967040 }
 0x22a   :  { %228 = vsyncpa [#allocation3], 1 }
 0x22b   :  { %229 = vsyncpa [#allocation6], 1 }
 0x22c   :  { %230 = vsyncpa [#allocation4], 1 }
 0x22d   :  { %231 = vsyncpa [#allocation9], 1 }

</bundles_post_ra>
